<compile_context>
chip_gen: v5e
topology: v5e:2x2
jax: 0.10.0
libtpu: 0.0.40
codegen_flags: <defaults>
</compile_context>

<pallas_src>
import functools

import jax
import jax.numpy as jnp
from jax.experimental import pallas as pl
from jax.experimental.pallas import tpu as pltpu

N = 3
Z = 3
HIDDEN = 64
OUT = N * 2           # 6 real output features
OUT_ROWS = 8          # fc3 output rows padded to one sublane group (zeros)
NEG_SLOPE = 0.01      # nn.LeakyReLU default negative_slope
LANE = 128


def _leaky_relu(x):
    # Identical to where(x > 0, x, 0.01*x) for slope < 1, but one vmul + one
    # vmax per vreg instead of cmp + mul + select.
    return jnp.maximum(x, NEG_SLOPE * x)


def _round_up(x, m):
    return (x + m - 1) // m * m


def _cdiv(a, b):
    return -(-a // b)


def _choose_tile(batch, batch_tile):
    """Pick (lane_tile, padded_batch, grid_len).

    Batch sits on the lane axis, so everything is in units of 128 lanes.  Pad
    the batch to a multiple of 128 only (not a full tile), pick the number of
    grid steps so the tile stays <= batch_tile, and force >= 2 steps whenever
    there is more than one 128-lane block so the "parallel" grid axis can be
    sharded across both v7x TensorCores.
    """
    n_blocks = _round_up(max(batch, 1), LANE) // LANE
    steps = _cdiv(n_blocks * LANE, max(batch_tile, LANE))
    if n_blocks > 1:
        steps = max(steps, 2)          # keep both v7x TCs busy when possible
    steps = min(steps, n_blocks)
    blocks_per_step = _cdiv(n_blocks, steps)
    tile = blocks_per_step * LANE
    steps = _cdiv(n_blocks, blocks_per_step)
    return tile, steps * tile, steps


def generator_kernel(xt_ref, w1t_ref, b1t_ref, w2t_ref, b2t_ref,
                     w3t_ref, b3t_ref, o_ref):
    """Fused 3-layer MLP forward for one batch tile (batch on the lane axis).

    xt_ref : (Z, tile)          x^T for this tile
    w1t    : (HIDDEN, Z)        b1t : (HIDDEN, 1)
    w2t    : (HIDDEN, HIDDEN)   b2t : (HIDDEN, 1)
    w3t    : (OUT_ROWS, HIDDEN) b3t : (OUT_ROWS, 1)   (rows >= OUT are zero)
    o_ref  : (OUT_ROWS, tile)   out^T, lane-dense unmasked stores
    """
    xt = xt_ref[...]                                    # (Z, tile) f32

    # --- fc1: K=3 contraction as Z broadcast-FMAs on the VPU -----------------
    # (3/128 MXU contraction depth is a waste; VALU slots are idle here.)
    h1 = b1t_ref[...] + w1t_ref[:, 0:1] * xt[0:1, :]    # (HIDDEN, tile)
    for k in range(1, Z):                               # Z static -> unrolled
        h1 = h1 + w1t_ref[:, k:k + 1] * xt[k:k + 1, :]
    h1 = _leaky_relu(h1)

    # --- fc2: (64,64) @ (64,tile) on the MXU ---------------------------------
    h2 = jnp.dot(w2t_ref[...], h1, preferred_element_type=jnp.float32)
    h2 = _leaky_relu(h2 + b2t_ref[...])

    # --- fc3: (8,64) @ (64,tile) on the MXU, lane-dense (8, tile) output -----
    out = jnp.dot(w3t_ref[...], h2, preferred_element_type=jnp.float32)
    o_ref[...] = (out + b3t_ref[...]).astype(o_ref.dtype)


@functools.partial(jax.jit, static_argnames=("batch_tile",))
def generator_forward(x, params, *, batch_tile=8192):
    """x: (B, Z) float32.  Returns (B, OUT) float32 == PyTorch module forward."""
    B, z = x.shape
    assert z == Z

    # Transposed parameter copies (out_features, in_features); fc3 rows padded
    # from OUT=6 to OUT_ROWS=8 with zeros (discarded by the final slice).
    w1t = params["w1"].T                                   # (HIDDEN, Z)
    b1t = params["b1"].T                                   # (HIDDEN, 1)
    w2t = params["w2"].T                                   # (HIDDEN, HIDDEN)
    b2t = params["b2"].T                                   # (HIDDEN, 1)
    w3t = jnp.pad(params["w3"].T, ((0, OUT_ROWS - OUT), (0, 0)))   # (8, HIDDEN)
    b3t = jnp.pad(params["b3"].T, ((0, OUT_ROWS - OUT), (0, 0)))   # (8, 1)

    tile, B_pad, grid_len = _choose_tile(B, batch_tile)

    # Batch on the lane axis: x^T (Z, B_pad), zero-padded columns are sliced
    # off the result.  Padded columns only produce bias-propagated values in
    # their own (discarded) output columns.
    xt = jnp.pad(x, ((0, B_pad - B), (0, 0))).T            # (Z, B_pad)

    const = lambda shape: pl.BlockSpec(shape, lambda i: (0, 0))

    cost = pl.CostEstimate(
        flops=2 * B_pad * (Z * HIDDEN + HIDDEN * HIDDEN + HIDDEN * OUT_ROWS),
        transcendentals=0,
        bytes_accessed=(
            B_pad * (Z + OUT_ROWS) * 4
            + 4 * (w1t.size + b1t.size + w2t.size + b2t.size
                   + w3t.size + b3t.size)
        ),
    )

    out_t = pl.pallas_call(
        generator_kernel,
        out_shape=jax.ShapeDtypeStruct((OUT_ROWS, B_pad), jnp.float32),
        grid_spec=pltpu.PrefetchScalarGridSpec(
            num_scalar_prefetch=0,
            grid=(grid_len,),
            in_specs=[
                pl.BlockSpec((Z, tile), lambda i: (0, i)),   # x^T batch tile
                const(w1t.shape), const(b1t.shape),
                const(w2t.shape), const(b2t.shape),
                const(w3t.shape), const(b3t.shape),
            ],
            out_specs=pl.BlockSpec((OUT_ROWS, tile), lambda i: (0, i)),
        ),
        compiler_params=pltpu.CompilerParams(
            # Batch axis is embarrassingly parallel -> megacore sharding.
            dimension_semantics=("parallel",),
        ),
        cost_estimate=cost,
    )(xt, w1t, b1t, w2t, b2t, w3t, b3t)

    # Drop the 2 zero rows and padded lanes, back to (B, OUT) row-major.
    return out_t[:OUT, :B].T


def init_params(key):
    """Deterministic init mimicking PyTorch nn.Linear default
    (uniform +-1/sqrt(fan_in)).  Weights stored as (in_features, out_features),
    biases as (1, out_features)."""
    ks = jax.random.split(key, 6)

    def linear(kw, kb, fan_in, fan_out):
        bound = 1.0 / jnp.sqrt(jnp.float32(fan_in))
        w = jax.random.uniform(kw, (fan_in, fan_out), jnp.float32, -bound, bound)
        b = jax.random.uniform(kb, (1, fan_out), jnp.float32, -bound, bound)
        return w, b

    w1, b1 = linear(ks[0], ks[1], Z, HIDDEN)
    w2, b2 = linear(ks[2], ks[3], HIDDEN, HIDDEN)
    w3, b3 = linear(ks[4], ks[5], HIDDEN, OUT)
    return {"w1": w1, "b1": b1, "w2": w2, "b2": b2, "w3": w3, "b3": b3}


def reference_forward(x, p):
    h1 = _leaky_relu(x @ p["w1"] + p["b1"])
    h2 = _leaky_relu(h1 @ p["w2"] + p["b2"])
    return h2 @ p["w3"] + p["b3"]


if __name__ == "__main__":
    key = jax.random.PRNGKey(0)
    k_params, k_x1, k_x2 = jax.random.split(key, 3)

    params = init_params(k_params)

    # Small shape consistent with the module (Z=3 latent inputs).
    batch = 8
    x = jax.random.normal(k_x1, (batch, Z), jnp.float32)
    out = jax.block_until_ready(generator_forward(x, params))
    ref = reference_forward(x, params)
    assert out.shape == (batch, OUT)
    assert jnp.allclose(out, ref, atol=1e-5, rtol=1e-5), "mismatch vs reference (B=8)"

    # Exercise lane padding + a 2-step grid (B=200 -> B_pad=256, tile=128).
    batch2 = 200
    x2 = jax.random.normal(k_x2, (batch2, Z), jnp.float32)
    out2 = jax.block_until_ready(generator_forward(x2, params))
    ref2 = reference_forward(x2, params)
    assert out2.shape == (batch2, OUT)
    assert jnp.allclose(out2, ref2, atol=1e-5, rtol=1e-5), "mismatch vs reference (B=200)"

    print("KERNEL_OK")
</pallas_src>

<mosaic_0001>
module attributes {stable_mosaic.version = 11 : i64} {
  func.func @generator_kernel(%arg0: i32, %arg1: memref<3x128xf32, #tpu.memory_space<vmem>>, %arg2: memref<64x3xf32, #tpu.memory_space<vmem>>, %arg3: memref<64x1xf32, #tpu.memory_space<vmem>>, %arg4: memref<64x64xf32, #tpu.memory_space<vmem>>, %arg5: memref<64x1xf32, #tpu.memory_space<vmem>>, %arg6: memref<8x64xf32, #tpu.memory_space<vmem>>, %arg7: memref<8x1xf32, #tpu.memory_space<vmem>>, %arg8: memref<8x128xf32, #tpu.memory_space<vmem>>) attributes {dimension_semantics = [#tpu.dimension_semantics<parallel>], iteration_bounds = array<i64: 1>, scalar_prefetch = 0 : i64, scratch_operands = 0 : i64, tpu.core_type = #tpu.core_type<tc>, window_params = [{transform_indices = @transform_0, window_bounds = array<i64: 3, 128>}, {pipeline_mode = #tpu.pipeline_mode<synchronous>, transform_indices = @transform_1, window_bounds = array<i64: 64, 3>}, {pipeline_mode = #tpu.pipeline_mode<synchronous>, transform_indices = @transform_2, window_bounds = array<i64: 64, 1>}, {pipeline_mode = #tpu.pipeline_mode<synchronous>, transform_indices = @transform_3, window_bounds = array<i64: 64, 64>}, {pipeline_mode = #tpu.pipeline_mode<synchronous>, transform_indices = @transform_4, window_bounds = array<i64: 64, 1>}, {pipeline_mode = #tpu.pipeline_mode<synchronous>, transform_indices = @transform_5, window_bounds = array<i64: 8, 64>}, {pipeline_mode = #tpu.pipeline_mode<synchronous>, transform_indices = @transform_6, window_bounds = array<i64: 8, 1>}, {transform_indices = @transform_7, window_bounds = array<i64: 8, 128>}]} {
    %c0 = arith.constant 0 : index
    %c0_0 = arith.constant 0 : index
    %0 = vector.load %arg1[%c0, %c0_0] : memref<3x128xf32, #tpu.memory_space<vmem>>, vector<3x128xf32>
    %c0_1 = arith.constant 0 : index
    %c0_2 = arith.constant 0 : index
    %1 = vector.load %arg3[%c0_1, %c0_2] : memref<64x1xf32, #tpu.memory_space<vmem>>, vector<64x1xf32>
    %c0_3 = arith.constant 0 : index
    %c0_4 = arith.constant 0 : index
    %2 = vector.load %arg2[%c0_3, %c0_4] : memref<64x3xf32, #tpu.memory_space<vmem>>, vector<64x1xf32>
    %3 = vector.extract_strided_slice %0 {offsets = [0, 0], sizes = [1, 128], strides = [1, 1]} : vector<3x128xf32> to vector<1x128xf32>
    %4 = vector.broadcast %2 : vector<64x1xf32> to vector<64x128xf32>
    %5 = vector.broadcast %3 : vector<1x128xf32> to vector<64x128xf32>
    %6 = arith.mulf %4, %5 : vector<64x128xf32>
    %7 = vector.broadcast %1 : vector<64x1xf32> to vector<64x128xf32>
    %8 = arith.addf %7, %6 : vector<64x128xf32>
    %c0_5 = arith.constant 0 : index
    %c1 = arith.constant 1 : index
    %9 = vector.load %arg2[%c0_5, %c1] : memref<64x3xf32, #tpu.memory_space<vmem>>, vector<64x1xf32>
    %10 = vector.extract_strided_slice %0 {offsets = [1, 0], sizes = [1, 128], strides = [1, 1]} : vector<3x128xf32> to vector<1x128xf32>
    %11 = vector.broadcast %9 : vector<64x1xf32> to vector<64x128xf32>
    %12 = vector.broadcast %10 : vector<1x128xf32> to vector<64x128xf32>
    %13 = arith.mulf %11, %12 : vector<64x128xf32>
    %14 = arith.addf %8, %13 : vector<64x128xf32>
    %c0_6 = arith.constant 0 : index
    %c2 = arith.constant 2 : index
    %15 = vector.load %arg2[%c0_6, %c2] : memref<64x3xf32, #tpu.memory_space<vmem>>, vector<64x1xf32>
    %16 = vector.extract_strided_slice %0 {offsets = [2, 0], sizes = [1, 128], strides = [1, 1]} : vector<3x128xf32> to vector<1x128xf32>
    %17 = vector.broadcast %15 : vector<64x1xf32> to vector<64x128xf32>
    %18 = vector.broadcast %16 : vector<1x128xf32> to vector<64x128xf32>
    %19 = arith.mulf %17, %18 : vector<64x128xf32>
    %20 = arith.addf %14, %19 : vector<64x128xf32>
    %cst = arith.constant 0.00999999977 : f32
    %21 = vector.broadcast %cst : f32 to vector<64x128xf32>
    %22 = arith.mulf %21, %20 : vector<64x128xf32>
    %23 = arith.maximumf %20, %22 : vector<64x128xf32>
    %c0_7 = arith.constant 0 : index
    %c0_8 = arith.constant 0 : index
    %24 = vector.load %arg4[%c0_7, %c0_8] : memref<64x64xf32, #tpu.memory_space<vmem>>, vector<64x64xf32>
    %cst_9 = arith.constant dense<0.000000e+00> : vector<64x128xf32>
    %25 = tpu.matmul %24, %23, %cst_9 {dimension_numbers = #tpu.dot_dimension_numbers<[1], [0], [0], [1], [0, 0, 1, 1], [], []>} : vector<64x64xf32>, vector<64x128xf32>, vector<64x128xf32> -> vector<64x128xf32>
    %c0_10 = arith.constant 0 : index
    %c0_11 = arith.constant 0 : index
    %26 = vector.load %arg5[%c0_10, %c0_11] : memref<64x1xf32, #tpu.memory_space<vmem>>, vector<64x1xf32>
    %27 = vector.broadcast %26 : vector<64x1xf32> to vector<64x128xf32>
    %28 = arith.addf %25, %27 : vector<64x128xf32>
    %cst_12 = arith.constant 0.00999999977 : f32
    %29 = vector.broadcast %cst_12 : f32 to vector<64x128xf32>
    %30 = arith.mulf %29, %28 : vector<64x128xf32>
    %31 = arith.maximumf %28, %30 : vector<64x128xf32>
    %c0_13 = arith.constant 0 : index
    %c0_14 = arith.constant 0 : index
    %32 = vector.load %arg6[%c0_13, %c0_14] : memref<8x64xf32, #tpu.memory_space<vmem>>, vector<8x64xf32>
    %cst_15 = arith.constant dense<0.000000e+00> : vector<8x128xf32>
    %33 = tpu.matmul %32, %31, %cst_15 {dimension_numbers = #tpu.dot_dimension_numbers<[1], [0], [0], [1], [0, 0, 1, 1], [], []>} : vector<8x64xf32>, vector<64x128xf32>, vector<8x128xf32> -> vector<8x128xf32>
    %c0_16 = arith.constant 0 : index
    %c0_17 = arith.constant 0 : index
    %34 = vector.load %arg7[%c0_16, %c0_17] : memref<8x1xf32, #tpu.memory_space<vmem>>, vector<8x1xf32>
    %35 = vector.broadcast %34 : vector<8x1xf32> to vector<8x128xf32>
    %36 = arith.addf %33, %35 : vector<8x128xf32>
    %c0_18 = arith.constant 0 : index
    %c0_19 = arith.constant 0 : index
    %37 = vector.load %arg8[%c0_18, %c0_19] : memref<8x128xf32, #tpu.memory_space<vmem>>, vector<8x128xf32>
    tpu.vector_store %arg8[%c0_18, %c0_19], %36 {strides = array<i32>} : memref<8x128xf32, #tpu.memory_space<vmem>>, vector<8x128xf32>,
    return
  }
  func.func @transform_0(%arg0: i32) -> (i32, i32) {
    %c0_i32 = arith.constant 0 : i32
    %c0_i32_0 = arith.constant 0 : i32
    return %c0_i32, %arg0 : i32, i32
  }
  func.func @transform_1(%arg0: i32) -> (i32, i32) {
    %c0_i32 = arith.constant 0 : i32
    %c0_i32_0 = arith.constant 0 : i32
    %c0_i32_1 = arith.constant 0 : i32
    return %c0_i32, %c0_i32_0 : i32, i32
  }
  func.func @transform_2(%arg0: i32) -> (i32, i32) {
    %c0_i32 = arith.constant 0 : i32
    %c0_i32_0 = arith.constant 0 : i32
    %c0_i32_1 = arith.constant 0 : i32
    return %c0_i32, %c0_i32_0 : i32, i32
  }
  func.func @transform_3(%arg0: i32) -> (i32, i32) {
    %c0_i32 = arith.constant 0 : i32
    %c0_i32_0 = arith.constant 0 : i32
    %c0_i32_1 = arith.constant 0 : i32
    return %c0_i32, %c0_i32_0 : i32, i32
  }
  func.func @transform_4(%arg0: i32) -> (i32, i32) {
    %c0_i32 = arith.constant 0 : i32
    %c0_i32_0 = arith.constant 0 : i32
    %c0_i32_1 = arith.constant 0 : i32
    return %c0_i32, %c0_i32_0 : i32, i32
  }
  func.func @transform_5(%arg0: i32) -> (i32, i32) {
    %c0_i32 = arith.constant 0 : i32
    %c0_i32_0 = arith.constant 0 : i32
    %c0_i32_1 = arith.constant 0 : i32
    return %c0_i32, %c0_i32_0 : i32, i32
  }
  func.func @transform_6(%arg0: i32) -> (i32, i32) {
    %c0_i32 = arith.constant 0 : i32
    %c0_i32_0 = arith.constant 0 : i32
    %c0_i32_1 = arith.constant 0 : i32
    return %c0_i32, %c0_i32_0 : i32, i32
  }
  func.func @transform_7(%arg0: i32) -> (i32, i32) {
    %c0_i32 = arith.constant 0 : i32
    %c0_i32_0 = arith.constant 0 : i32
    return %c0_i32, %arg0 : i32, i32
  }
}

</mosaic_0001>

<bundles_post_ra>
// kernel: generator_forward.1
= control target key start
LH: loop header
LB: loop body
LE: loop exit
PB: predicated region body
PF: predicated region fallthrough
CT: control target
= control target key end

     0   :  { %v480_v0 = vmov 1   ;;  %v481_v1 = vmov 0   ;;  %v482_v8 = vmov 2   ;;  %vm310_vm0 = vcmask 523264   ;;  %s687_s2 = inlined_call_operand.vmem [shape: f32[64,1], index: 2, kind: input, shape index: {}]   ;;  %s688_s1 = inlined_call_operand.vmem [shape: f32[64,3], index: 1, kind: input, shape index: {}]   ;;  %s689_s0 = inlined_call_operand.vmem [shape: f32[3,128], index: 0, kind: input, shape index: {}]   ;;  %s690_s4 = inlined_call_operand.vmem [shape: f32[64,1], index: 4, kind: input, shape index: {}]   ;;  %s691_s6 = inlined_call_operand.vmem [shape: f32[8,1], index: 6, kind: input, shape index: {}]   ;;  %s692_s3 = inlined_call_operand.vmem [shape: f32[64,64], index: 3, kind: input, shape index: {}]   ;;  %s693_s5 = inlined_call_operand.vmem [shape: f32[8,64], index: 5, kind: input, shape index: {}]   ;;  %s694_s7 = inlined_call_operand.vmem [shape: f32[8,128], index: 7, kind: output, shape index: {}]  }
   0x1   :  { %458 = vset.pattern.permute.xlu0 %v480_v0  ;;  %457 = vset.pattern.permute.xlu2 %v481_v1  ;;  %v34_v2 = vld [vmem:[%s687_s2 + $0x38] sm:$0xff]  ;;  %v41_v3 = vld [vmem:[%s688_s1 + $0x30] sm:$0xff]  ;;  %v40_v4 = vld [vmem:[%s688_s1 + $0x28] sm:$0xff] }
   0x2   :  { %455 = vset.pattern.permute.xlu1 %v481_v1  ;;  %165 = vperm.xlu0 %458, %v41_v3   ;;  %v33_v5 = vld [vmem:[%s687_s2 + $0x30] sm:$0xff]  ;;  %v42_v6 = vld [vmem:[%s688_s1 + $0x38] sm:$0xff]  ;;  %v39_v7 = vld [vmem:[%s688_s1 + $0x20] sm:$0xff] }
   0x3   :  { %129 = vperm.xlu1 %455, %v34_v2   ;;  %70 = vperm.xlu2 %457, %v40_v4   ;;  %v37_v9 = vld [vmem:[%s688_s1 + $0x10] sm:$0xff]  ;;  %v32_v10 = vld [vmem:[%s687_s2 + $0x28] sm:$0xff]  ;;  %v31_v12 = vld [vmem:[%s687_s2 + $0x20] sm:$0xff] }
   0x4   :  { %v29_v11 = vld [vmem:[%s687_s2 + $0x10] sm:$0xff]  ;;  %v38_v13 = vld [vmem:[%s688_s1 + $0x18] sm:$0xff]  ;;  %v35_v14 = vld [vmem:[%s688_s1] sm:$0xff] }
   0x5   :  { %v30_v15 = vld [vmem:[%s687_s2 + $0x18] sm:$0xff]  ;;  %v36_v16 = vld [vmem:[%s688_s1 + $0x8] sm:$0xff]  ;;  %v27_v18 = vld [vmem:[%s687_s2] sm:$0xff] }
   0x6   :  { %v28_v17 = vld [vmem:[%s687_s2 + $0x8] sm:$0xff]  ;;  %v26_v24 = vld [vmem:[%s689_s0] sm:$0x7] }
   0x7   :  { %v585_v25 = vperm.slane %v26_v24, 0  ;;  %v588_v30 = vperm.slane %v26_v24, 1  ;;  %v590_v32 = vperm.slane %v26_v24, 2 }
   0xa   :  { %459 = vset.pattern.permute.xlu0 %v481_v1 }
   0xb   :  { %456 = vset.pattern.permute.xlu1 %v480_v0  ;;  %124 = vperm.xlu2 %457, %v33_v5  }
   0xc   :  { %169 = vperm.xlu1 %456, %v42_v6   ;;  %80 = vperm.xlu0 %459, %v42_v6  }
  0x13   :  { %65 = vperm.xlu2 %457, %v39_v7  }
  0x14   :  { %460 = vset.pattern.permute.xlu1 %v482_v8  ;;  %75 = vperm.xlu0 %459, %v41_v3  }
  0x15   :  { %218 = vperm.xlu1 %460, %v42_v6  }
  0x1b   :  { %462 = vset.pattern.permute.xlu2 %v480_v0 }
  0x1c   :  { %161 = vperm.xlu2 %462, %v40_v4   ;;  %55 = vperm.xlu0 %459, %v37_v9  }
  0x1d   :  { %461 = vset.pattern.permute.xlu1 %v481_v1 }
  0x1e   :  { %119 = vperm.xlu1 %461, %v32_v10  }
  0x24   :  { %463 = vset.pattern.permute.xlu2 %v481_v1  ;;  %104 = vperm.xlu0 %459, %v29_v11  }
  0x25   :  { %114 = vperm.xlu2 %463, %v31_v12  }
  0x26   :  { %60 = vperm.xlu1 %461, %v38_v13  }
  0x2c   :  { %45 = vperm.xlu0 %459, %v35_v14  }
  0x2d   :  { %465 = vset.pattern.permute.xlu2 %v482_v8 }
  0x2e   :  { %464 = vset.pattern.permute.xlu1 %v480_v0  ;;  %210 = vperm.xlu2 %465, %v40_v4  }
  0x2f   :  { %157 = vperm.xlu1 %464, %v39_v7  }
  0x34   :  { %472 = vset.pattern.permute.xlu0 %v482_v8 }
  0x35   :  { %214 = vperm.xlu0 %472, %v41_v3  }
  0x36   :  { %467 = vset.pattern.permute.xlu2 %v480_v0 }
  0x37   :  { %466 = vset.pattern.permute.xlu1 %v481_v1  ;;  %153 = vperm.xlu2 %467, %v38_v13  }
  0x38   :  { %109 = vperm.xlu1 %466, %v30_v15  }
  0x3d   :  { %198 = vperm.xlu0 %472, %v37_v9  }
  0x3f   :  { %469 = vset.pattern.permute.xlu2 %v481_v1 }
  0x40   :  { %468 = vset.pattern.permute.xlu1 %v482_v8  ;;  %50 = vperm.xlu2 %469, %v36_v16  }
  0x41   :  { %206 = vperm.xlu1 %468, %v39_v7  }
  0x45   :  { %477 = vset.pattern.permute.xlu0 %v481_v1 }
  0x48   :  { %471 = vset.pattern.permute.xlu2 %v482_v8 }
  0x49   :  { %470 = vset.pattern.permute.xlu1 %v480_v0  ;;  %202 = vperm.xlu2 %471, %v38_v13  }
  0x4a   :  { %149 = vperm.xlu1 %470, %v37_v9  }
  0x51   :  { %474 = vset.pattern.permute.xlu2 %v480_v0 }
  0x52   :  { %473 = vset.pattern.permute.xlu1 %v481_v1  ;;  %145 = vperm.xlu2 %474, %v36_v16  }
  0x53   :  { %99 = vperm.xlu1 %473, %v28_v17  }
  0x5a   :  { %141 = vperm.xlu2 %474, %v35_v14  }
  0x5b   :  { %94 = vperm.xlu1 %473, %v27_v18  }
  0x5d   :  { %v71_v19 = vpop.permute.xlu2 %70 }
  0x5e   :  { %v89_v48 = vmul.f32 %v585_v25, %v71_v19 }
  0x62   :  { %476 = vset.pattern.permute.xlu2 %v482_v8 }
  0x63   :  { %475 = vset.pattern.permute.xlu1 %v482_v8  ;;  %190 = vperm.xlu2 %476, %v35_v14  }
  0x64   :  { %194 = vperm.xlu1 %475, %v36_v16  }
  0x65   :  { %v125_v20 = vpop.permute.xlu2 %124 }
  0x6b   :  { %479 = vset.pattern.permute.xlu2 %v481_v1 }
  0x6c   :  { %478 = vset.pattern.permute.xlu1 %v481_v1 }
  0x6d   :  { %v66_v22 = vpop.permute.xlu2 %65 }
  0x6e   :  { %v88_v8 = vmul.f32 %v585_v25, %v66_v22 }
  0x74   :  { %v166_v21 = vpop.permute.xlu0 %165 }
  0x75   :  { %v130_v23 = vpop.permute.xlu1 %129  ;;  %v179_v57 = vmul.f32 %v588_v30, %v166_v21 }
  0x76   :  { %v162_v28 = vpop.permute.xlu2 %161 }
  0x77   :  { %v178_v50 = vmul.f32 %v588_v30, %v162_v28 }
  0x7e   :  { %v170_v26 = vpop.permute.xlu1 %169  ;;  %v81_v27 = vpop.permute.xlu0 %80 }
  0x7f   :  { %v91_v29 = vmul.f32 %v585_v25, %v81_v27  ;;  %v180_v33 = vmul.f32 %v588_v30, %v170_v26  ;;  %v115_v38 = vpop.permute.xlu2 %114 }
  0x80   :  { %v136_v13 = vadd.f32 %v115_v38, %v88_v8 }
  0x81   :  { %v139_v31 = vadd.f32 %v130_v23, %v91_v29 }
  0x83   :  { %v188_v36 = vadd.f32 %v180_v33, %v139_v31 }
  0x86   :  { %v76_v34 = vpop.permute.xlu0 %75 }
  0x87   :  { %v219_v35 = vpop.permute.xlu1 %218  ;;  %v90_v52 = vmul.f32 %v585_v25, %v76_v34 }
  0x88   :  { %v229_v37 = vmul.f32 %v590_v32, %v219_v35  ;;  %v211_v44 = vpop.permute.xlu2 %210 }
  0x89   :  { %v227_v55 = vmul.f32 %v590_v32, %v211_v44  ;;  %v138_v58 = vadd.f32 %v125_v20, %v90_v52  ;;  %v266_v52 = vld [vmem:[%s690_s4 + $0x20] sm:$0xff] }
  0x8a   :  { %v237_v39 = vadd.f32 %v229_v37, %v188_v36 }
  0x8b   :  { %v187_v61 = vadd.f32 %v179_v57, %v138_v58  ;;  %v263_v57 = vld [vmem:[%s690_s4 + $0x8] sm:$0xff]  ;;  %v393_v58 = vld [vmem:[%s691_s6] sm:$0xff] }
  0x8c   :  { %v245_v40 = vmul.f32 0.01, %v237_v39 }
  0x8e   :  { %v56_v41 = vpop.permute.xlu0 %55  ;;  %v253_v42 = vmax.f32 %v237_v39, %v245_v40  ;;  %v268_v39 = vld [vmem:[%s690_s4 + $0x30] sm:$0xff]  ;;  %v269_v40 = vld [vmem:[%s690_s4 + $0x38] sm:$0xff] }
  0x8f   :  { %v86_v21 = vmul.f32 %v585_v25, %v56_v41  ;;  %302 = vperm.xlu1 %478, %v268_v39   ;;  %307 = vperm.xlu0 %477, %v269_v40  }
  0x90   :  { %v120_v43 = vpop.permute.xlu1 %119  ;;  %343 = vmatpush.msra.mxu0 %v253_v42  ;;  %436 = vmatpush.msra.mxu2 %v253_v42 }
  0x91   :  { %437 = vmatpush.msra.mxu3 %v253_v42  ;;  %v154_v47 = vpop.permute.xlu2 %153  ;;  %v137_v51 = vadd.f32 %v120_v43, %v89_v48 }
  0x92   :  { %v176_v3 = vmul.f32 %v588_v30, %v154_v47 }
  0x93   :  { %v186_v54 = vadd.f32 %v178_v50, %v137_v51 }
  0x95   :  { %v235_v59 = vadd.f32 %v227_v55, %v186_v54 }
  0x96   :  { %v105_v45 = vpop.permute.xlu0 %104 }
  0x97   :  { %v243_v2 = vmul.f32 0.01, %v235_v59  ;;  %v134_v28 = vadd.f32 %v105_v45, %v86_v21  ;;  %292 = vperm.xlu1 %478, %v266_v52   ;;  %v392_v52 = vld [vmem:[%s693_s5] sm:$0xff] }
  0x98   :  { %v61_v46 = vpop.permute.xlu1 %60 }
  0x99   :  { %v87_v63 = vmul.f32 %v585_v25, %v61_v46  ;;  %v251_v9 = vmax.f32 %v235_v59, %v243_v2  ;;  %v265_v59 = vld [vmem:[%s690_s4 + $0x18] sm:$0xff]  ;;  %v262_v2 = vld [vmem:[%s690_s4] sm:$0xff] }
  0x9a   :  { %v600_v56 = vpop.permute.xlu2 %50 }
  0x9b   :  { %v85_v45 = vmul.f32 %v585_v25, %v600_v56 }
  0x9e   :  { %v595_v49 = vpop.permute.xlu0 %45 }
  0x9f   :  { %v84_v41 = vmul.f32 %v585_v25, %v595_v49  ;;  %v264_v49 = vld [vmem:[%s690_s4 + $0x10] sm:$0xff]  ;;  %v267_v25 = vld [vmem:[%s690_s4 + $0x28] sm:$0xff]  ;;  %277 = vperm.xlu1 %478, %v263_v57  }
  0xa0   :  { %282 = vperm.xlu0 %477, %v264_v49   ;;  %297 = vperm.xlu2 %479, %v267_v25  }
  0xa1   :  { %v158_v53 = vpop.permute.xlu1 %157 }
  0xa2   :  { %v177_v10 = vmul.f32 %v588_v30, %v158_v53 }
  0xa3   :  { %v203_v6 = vpop.permute.xlu2 %202 }
  0xa4   :  { %v225_v12 = vmul.f32 %v590_v32, %v203_v6  ;;  %v185_v15 = vadd.f32 %v177_v10, %v136_v13  ;;  %v258_v6 = vld [vmem:[%s692_s3 + $0x20] sm:$0xff] }
  0xa7   :  { %v215_v60 = vpop.permute.xlu0 %214 }
  0xa8   :  { %v228_v62 = vmul.f32 %v590_v32, %v215_v60  ;;  %396 = vperm.xlu0 %477, %v393_v58   ;;  %287 = vperm.xlu2 %479, %v265_v59  }
  0xaa   :  { %v236_v0 = vadd.f32 %v228_v62, %v187_v61  ;;  %v110_v1 = vpop.permute.xlu1 %109 }
  0xab   :  { %v135_v5 = vadd.f32 %v110_v1, %v87_v63  ;;  %v256_v63 = vld [vmem:[%s692_s3 + $0x10] sm:$0xff]  ;;  %v254_v1 = vld [vmem:[%s692_s3] sm:$0xff] }
  0xac   :  { %v244_v4 = vmul.f32 0.01, %v236_v0  ;;  %v146_v27 = vpop.permute.xlu2 %145 }
  0xad   :  { %v184_v11 = vadd.f32 %v176_v3, %v135_v5  ;;  %v174_v47 = vmul.f32 %v588_v30, %v146_v27  ;;  %v257_v3 = vld [vmem:[%s692_s3 + $0x18] sm:$0xff]  ;;  %v255_v5 = vld [vmem:[%s692_s3 + $0x8] sm:$0xff] }
  0xae   :  { %v252_v7 = vmax.f32 %v236_v0, %v244_v4  ;;  %v259_v0 = vld [vmem:[%s692_s3 + $0x28] sm:$0xff]  ;;  %v260_v4 = vld [vmem:[%s692_s3 + $0x30] sm:$0xff] }
  0xaf   :  { %v233_v16 = vadd.f32 %v225_v12, %v184_v11  ;;  %v199_v23 = vpop.permute.xlu0 %198 }
  0xb0   :  { %344 = vmatpush.msra.mxu0 %v252_v7  ;;  %438 = vmatpush.msra.mxu2 %v252_v7  ;;  %v224_v31 = vmul.f32 %v590_v32, %v199_v23 }
  0xb1   :  { %439 = vmatpush.msra.mxu3 %v252_v7  ;;  %v241_v19 = vmul.f32 0.01, %v233_v16  ;;  %272 = vperm.xlu2 %479, %v262_v2   ;;  %v261_v7 = vld [vmem:[%s692_s3 + $0x38] sm:$0xff] }
  0xb2   :  { %345 = vmatpush.msra.mxu0 %v251_v9  ;;  %440 = vmatpush.msra.mxu2 %v251_v9 }
  0xb3   :  { %441 = vmatpush.msra.mxu3 %v251_v9  ;;  %v207_v14 = vpop.permute.xlu1 %206  ;;  %v249_v26 = vmax.f32 %v233_v16, %v241_v19 }
  0xb4   :  { %v226_v17 = vmul.f32 %v590_v32, %v207_v14  ;;  %v142_v38 = vpop.permute.xlu2 %141 }
  0xb5   :  { %v173_v46 = vmul.f32 %v588_v30, %v142_v38 }
  0xb6   :  { %v234_v18 = vadd.f32 %v226_v17, %v185_v15 }
  0xb8   :  { %v242_v20 = vmul.f32 0.01, %v234_v18 }
  0xba   :  { %v250_v22 = vmax.f32 %v234_v18, %v242_v20 }
  0xbc   :  { %v150_v24 = vpop.permute.xlu1 %149  ;;  %346 = vmatpush.msra.mxu0 %v250_v22  ;;  %442 = vmatpush.msra.mxu2 %v250_v22 }
  0xbd   :  { %v175_v29 = vmul.f32 %v588_v30, %v150_v24  ;;  %443 = vmatpush.msra.mxu3 %v250_v22  ;;  %v191_v44 = vpop.permute.xlu2 %190 }
  0xbe   :  { %347 = vmatpush.msra.mxu0 %v249_v26  ;;  %444 = vmatpush.msra.mxu2 %v249_v26  ;;  %v222_v51 = vmul.f32 %v590_v32, %v191_v44 }
  0xbf   :  { %v183_v33 = vadd.f32 %v175_v29, %v134_v28  ;;  %445 = vmatpush.msra.mxu3 %v249_v26 }
  0xc1   :  { %v232_v34 = vadd.f32 %v224_v31, %v183_v33 }
  0xc3   :  { %v240_v35 = vmul.f32 0.01, %v232_v34 }
  0xc5   :  { %v100_v36 = vpop.permute.xlu1 %99  ;;  %v248_v37 = vmax.f32 %v232_v34, %v240_v35 }
  0xc6   :  { %v133_v48 = vadd.f32 %v100_v36, %v85_v45 }
  0xc7   :  { %348 = vmatpush.msra.mxu0 %v248_v37  ;;  %446 = vmatpush.msra.mxu2 %v248_v37 }
  0xc8   :  { %447 = vmatpush.msra.mxu3 %v248_v37  ;;  %v182_v53 = vadd.f32 %v174_v47, %v133_v48 }
  0xcd   :  { %v95_v42 = vpop.permute.xlu1 %94 }
  0xce   :  { %v132_v43 = vadd.f32 %v95_v42, %v84_v41 }
  0xd0   :  { %v181_v50 = vadd.f32 %v173_v46, %v132_v43 }
  0xd2   :  { %v230_v54 = vadd.f32 %v222_v51, %v181_v50 }
  0xd4   :  { %v238_v60 = vmul.f32 0.01, %v230_v54 }
  0xd6   :  { %v195_v30 = vpop.permute.xlu1 %194 }
  0xd7   :  { %v223_v55 = vmul.f32 %v590_v32, %v195_v30  ;;  %v246_v32 = vmax.f32 %v230_v54, %v238_v60 }
  0xd9   :  { %v231_v56 = vadd.f32 %v223_v55, %v182_v53 }
  0xdb   :  { %v239_v61 = vmul.f32 0.01, %v231_v56 }
  0xdd   :  { %v247_v62 = vmax.f32 %v231_v56, %v239_v61 }
  0xdf   :  { %349 = vmatpush.msra.mxu0 %v247_v62  ;;  %448 = vmatpush.msra.mxu2 %v247_v62 }
  0xe0   :  { %449 = vmatpush.msra.mxu3 %v247_v62 }
  0xe1   :  { %350 = vmatpush.msra.mxu0 %v246_v32  ;;  %450 = vmatpush.msra.mxu2 %v246_v32 }
  0xe2   :  { %451 = vmatpush.msra.mxu3 %v246_v32  ;;  %429 = vmatmul.msk.f32.vlgmr.msra.gmra.mxu2 %vm310_vm0, %v256_v63 }
  0xe3   :  { %432 = vmatmul.msk.f32.vlgmr.msra.gmra.mxu3 %vm310_vm0, %v259_v0  ;;  %427 = vmatmul.msk.f32.vlgmr.msra.gmra.mxu0 %vm310_vm0, %v254_v1 }
  0xea   :  { %430 = vmatmul.msk.f32.gmra.mxu2 %vm310_vm0, %v257_v3 }
  0xeb   :  { %433 = vmatmul.msk.f32.gmra.mxu3 %vm310_vm0, %v260_v4  ;;  %428 = vmatmul.msk.f32.gmra.mxu0 %vm310_vm0, %v255_v5 }
  0xf2   :  { %431 = vmatmul.msk.f32.gmra.mxu2 %vm310_vm0, %v258_v6 }
  0xf3   :  { %434 = vmatmul.msk.f32.gmra.mxu3 %vm310_vm0, %v261_v7 }
  0xfa   :  { %v298_v11 = vpop.permute.xlu2 %297 }
 0x101   :  { %v303_v10 = vpop.permute.xlu1 %302  ;;  %v308_v14 = vpop.permute.xlu0 %307 }
 0x102   :  { %v288_v17 = vpop.permute.xlu2 %287 }
 0x109   :  { %v293_v15 = vpop.permute.xlu1 %292 }
 0x10b   :  { %v273_v38 = vpop.permute.xlu2 %272 }
 0x111   :  { %v278_v33 = vpop.permute.xlu1 %277 }
 0x112   :  { %v283_v27 = vpop.permute.xlu0 %282 }
 0x11a   :  { %v397_v49 = vpop.permute.xlu0 %396 }
 0x160   :  { %v352_v16 = vpop.f32.mrf.mxu0 }
 0x161   :  { %v353_v43 = vadd.f32 %v352_v16, %v273_v38 }
 0x163   :  { %v376_v47 = vmul.f32 0.01, %v353_v43 }
 0x165   :  { %v358_v8 = vpop.f32.mrf.mxu2  ;;  %v384_v51 = vmax.f32 %v353_v43, %v376_v47 }
 0x166   :  { %v367_v9 = vpop.f32.mrf.mxu3  ;;  %v359_v35 = vadd.f32 %v358_v8, %v283_v27 }
 0x167   :  { %v368_v21 = vadd.f32 %v367_v9, %v298_v11 }
 0x168   :  { %v355_v34 = vpop.f32.mrf.mxu0  ;;  %v378_v42 = vmul.f32 0.01, %v359_v35 }
 0x169   :  { %v381_v28 = vmul.f32 0.01, %v368_v21  ;;  %v356_v40 = vadd.f32 %v355_v34, %v278_v33 }
 0x16a   :  { %v386_v48 = vmax.f32 %v359_v35, %v378_v42 }
 0x16b   :  { %v389_v41 = vmax.f32 %v368_v21, %v381_v28  ;;  %v377_v45 = vmul.f32 0.01, %v356_v40 }
 0x16d   :  { %v361_v12 = vpop.f32.mrf.mxu2  ;;  %v385_v50 = vmax.f32 %v356_v40, %v377_v45 }
 0x16e   :  { %v370_v13 = vpop.f32.mrf.mxu3  ;;  %v362_v29 = vadd.f32 %v361_v12, %v288_v17 }
 0x16f   :  { %v371_v18 = vadd.f32 %v370_v13, %v303_v10 }
 0x170   :  { %v379_v39 = vmul.f32 0.01, %v362_v29 }
 0x171   :  { %v382_v23 = vmul.f32 0.01, %v371_v18 }
 0x172   :  { %v387_v46 = vmax.f32 %v362_v29, %v379_v39 }
 0x173   :  { %v390_v37 = vmax.f32 %v371_v18, %v382_v23 }
 0x175   :  { %v364_v19 = vpop.f32.mrf.mxu2 }
 0x176   :  { %v373_v20 = vpop.f32.mrf.mxu3  ;;  %v365_v24 = vadd.f32 %v364_v19, %v293_v15 }
 0x177   :  { %v374_v22 = vadd.f32 %v373_v20, %v308_v14 }
 0x178   :  { %v380_v36 = vmul.f32 0.01, %v365_v24 }
 0x179   :  { %v383_v26 = vmul.f32 0.01, %v374_v22 }
 0x17a   :  { %v388_v44 = vmax.f32 %v365_v24, %v380_v36 }
 0x17b   :  { %v391_v31 = vmax.f32 %v374_v22, %v383_v26 }
 0x17d   :  { %410 = vmatpush.msra.mxu1 %v391_v31 }
 0x17f   :  { %411 = vmatpush.msra.mxu1 %v390_v37 }
 0x181   :  { %412 = vmatpush.msra.mxu1 %v389_v41 }
 0x183   :  { %413 = vmatpush.msra.mxu1 %v388_v44 }
 0x185   :  { %414 = vmatpush.msra.mxu1 %v387_v46 }
 0x187   :  { %415 = vmatpush.msra.mxu1 %v386_v48 }
 0x189   :  { %416 = vmatpush.msra.mxu1 %v385_v50 }
 0x18b   :  { %417 = vmatpush.msra.mxu1 %v384_v51 }
 0x18c   :  { %435 = vmatmul.msk.f32.vlgmr.msra.gmra.mxu1 %vm310_vm0, %v392_v52 }
 0x209   :  { %v419_v25 = vpop.f32.mrf.mxu1 }
 0x20a   :  { %v420_v30 = vadd.f32 %v419_v25, %v397_v49 }
 0x20c   :  { %422 = vst [vmem:[%s694_s7] sm:$0xff] %v420_v30 }

</bundles_post_ra>
